<compile_context>
chip_gen: v5e
topology: v5e:2x2
jax: 0.10.0
libtpu: 0.0.40
codegen_flags: <defaults>
</compile_context>

<pallas_src>
import math
import jax
import jax.numpy as jnp
from jax import lax
from jax.experimental import pallas as pl
from jax.experimental.pallas import tpu as pltpu

LEAKY_SLOPE = 0.2
NEG_INF = -9e15
BN_EPS = 1e-5
# Row tile: multiple of 32 (int8 sublane packing). Sized so the (TM,N) f32
# temporaries stay well inside the 64 MiB v7x VMEM for realistic N.
DEFAULT_TM = 128


# ----------------------------- kernels --------------------------------------
def _proj_kernel(x_ref, w_ref, a_ref, h_ref, s_ref):
    # h = X @ W ; s = h @ [a1 | a2]   (single (D,2) matmul instead of two (D,1))
    h = jnp.dot(x_ref[...], w_ref[...], preferred_element_type=jnp.float32)
    h_ref[...] = h
    s_ref[...] = jnp.dot(h, a_ref[...], preferred_element_type=jnp.float32)


def _attn_kernel(adj_ref, s1_ref, s2_ref, h_ref, hnew_ref, m_ref, z_ref):
    # attention logits for this row tile: e[r, c] = LeakyReLU(s1[r] + s2[c])
    e = s1_ref[...] + s2_ref[...]                       # (TM,1)+(1,N) -> (TM,N)
    e = jnp.where(e > 0, e, LEAKY_SLOPE * e)            # LeakyReLU(0.2)
    logits = jnp.where(adj_ref[...] > 0, e, jnp.float32(NEG_INF))
    m = jnp.max(logits, axis=1, keepdims=True)          # (TM,1)
    p = jnp.exp(logits - m)
    z = jnp.sum(p, axis=1, keepdims=True)               # (TM,1)
    att = p * pl.reciprocal(z, approx=True)             # EUP slot (free-ish)
    hnew_ref[...] = jnp.dot(att, h_ref[...], preferred_element_type=jnp.float32)
    m_ref[...] = m
    z_ref[...] = z


def _bn_bias_kernel(h_ref, bias_ref, out_ref):
    # BatchNorm1d in training mode (batch stats, biased variance, gamma=1,
    # beta=0 at init), eps=1e-5, then +bias (zeros at init, kept for exactness)
    h = h_ref[...]
    mean = jnp.mean(h, axis=0, keepdims=True)
    var = jnp.mean((h - mean) ** 2, axis=0, keepdims=True)
    out_ref[...] = (h - mean) * lax.rsqrt(var + jnp.float32(BN_EPS)) + bias_ref[...]


# ----------------------------- wrapper ---------------------------------------
def hicoex_forward(x, edge_index, params, tm=DEFAULT_TM):
    """HiCoEx.forward for nlayers=1, num_heads=1 (single GATLayer)."""
    w, a1, a2, bias = params
    N, F = x.shape
    D = w.shape[1]
    row, col = edge_index[0], edge_index[1]

    # choose row tile; pad only the row-indexed arrays (columns stay exactly N
    # so the masked softmax semantics are untouched, incl. zero-degree rows)
    if N <= tm:
        tm = N
        n_pad = N
    else:
        n_pad = pl.cdiv(N, tm) * tm
    grid = (n_pad // tm,)
    par = pltpu.CompilerParams(dimension_semantics=("parallel",))

    # dense adjacency as int8: kernel only needs adj > 0 (4x less HBM traffic)
    adj = jnp.zeros((n_pad, N), jnp.int8).at[row, col].set(1)

    # --- kernel 1: projection h = X @ W, s = h @ [a1 | a2] (row-tiled) -------
    a_cat = jnp.concatenate([a1, a2], axis=1)            # (D, 2)
    x_pad = x if n_pad == N else jnp.pad(x, ((0, n_pad - N), (0, 0)))
    h_pad, s_pad = pl.pallas_call(
        _proj_kernel,
        grid=grid,
        in_specs=[pl.BlockSpec((tm, F), lambda i: (i, 0)),
                  pl.BlockSpec((F, D), lambda i: (0, 0)),
                  pl.BlockSpec((D, 2), lambda i: (0, 0))],
        out_specs=(pl.BlockSpec((tm, D), lambda i: (i, 0)),
                   pl.BlockSpec((tm, 2), lambda i: (i, 0))),
        out_shape=(jax.ShapeDtypeStruct((n_pad, D), jnp.float32),
                   jax.ShapeDtypeStruct((n_pad, 2), jnp.float32)),
        compiler_params=par,
    )(x_pad, w, a_cat)

    h = h_pad[:N]                                        # (N, D) resident in k2
    s1 = s_pad[:, 0:1]                                   # (n_pad, 1) row-tiled
    s2_row = s_pad[:N, 1].reshape(1, N)                  # lane-dense (1, N)

    # --- kernel 2: masked row-softmax + att @ h (row-tiled, no N^2 output) ---
    h_new_pad, m_pad, z_pad = pl.pallas_call(
        _attn_kernel,
        grid=grid,
        in_specs=[pl.BlockSpec((tm, N), lambda i: (i, 0)),   # adj tile (int8)
                  pl.BlockSpec((tm, 1), lambda i: (i, 0)),   # s1 tile
                  pl.BlockSpec((1, N), lambda i: (0, 0)),    # s2 row (resident)
                  pl.BlockSpec((N, D), lambda i: (0, 0))],   # h (resident)
        out_specs=(pl.BlockSpec((tm, D), lambda i: (i, 0)),
                   pl.BlockSpec((tm, 1), lambda i: (i, 0)),
                   pl.BlockSpec((tm, 1), lambda i: (i, 0))),
        out_shape=(jax.ShapeDtypeStruct((n_pad, D), jnp.float32),
                   jax.ShapeDtypeStruct((n_pad, 1), jnp.float32),
                   jax.ShapeDtypeStruct((n_pad, 1), jnp.float32)),
        compiler_params=par,
    )(adj, s1, s2_row, h)

    # --- kernel 3: BatchNorm1d (training mode) + bias, O(N*D) ----------------
    h_out = pl.pallas_call(
        _bn_bias_kernel,
        in_specs=[pl.BlockSpec(memory_space=pltpu.MemorySpace.VMEM)] * 2,
        out_specs=pl.BlockSpec(memory_space=pltpu.MemorySpace.VMEM),
        out_shape=jax.ShapeDtypeStruct((N, D), jnp.float32),
    )(h_new_pad[:N], bias)

    # alpha = attention[row, col]: exact reconstruction from per-row softmax
    # stats (edges are always unmasked positions) -- O(E) gather in JAX glue.
    s1v = s_pad[:N, 0]
    s2v = s_pad[:N, 1]
    e_edge = s1v[row] + s2v[col]
    e_edge = jnp.where(e_edge > 0, e_edge, LEAKY_SLOPE * e_edge)
    alpha = jnp.exp(e_edge - m_pad[row, 0]) / z_pad[row, 0]
    return h_out, alpha


# ----------------------------- reference & demo -------------------------------
def _xavier_uniform(key, shape):
    fan_in, fan_out = shape[1], shape[0]
    bound = math.sqrt(6.0 / (fan_in + fan_out))
    return jax.random.uniform(key, shape, jnp.float32, -bound, bound)


def _reference_forward(h, edge_index, params):
    # pure-JAX reference mirroring the PyTorch GATLayer (num_heads=1)
    w, a1, a2, bias = params
    row, col = edge_index[0], edge_index[1]
    N = h.shape[0]
    adj = jnp.zeros((N, N), jnp.float32).at[row, col].set(1.0)
    hp = h @ w
    e = hp @ a1 + (hp @ a2).T
    e = jnp.where(e > 0, e, LEAKY_SLOPE * e)
    logits = jnp.where(adj > 0, e, NEG_INF)
    att = jax.nn.softmax(logits, axis=1)
    alpha = att[row, col]
    h_new = att @ hp
    mean = jnp.mean(h_new, axis=0, keepdims=True)
    var = jnp.mean((h_new - mean) ** 2, axis=0, keepdims=True)
    h_bn = (h_new - mean) / jnp.sqrt(var + BN_EPS)
    return h_bn + bias, alpha


if __name__ == "__main__":
    N, NFEAT, NHID = 16, 8, 32      # nodes, nfeat, nhid (num_heads=1, nlayers=1)
    E = 24

    key = jax.random.PRNGKey(0)
    kx, kw, ka, ke = jax.random.split(key, 4)

    x = jax.random.normal(kx, (N, NFEAT), jnp.float32)
    edge_index = jax.random.randint(ke, (2, E), 0, N, jnp.int32)

    # GATLayer parameters (xavier_uniform for W and a; bias zeros)
    W = _xavier_uniform(kw, (NFEAT, NHID))
    a = _xavier_uniform(ka, (2 * NHID, 1))
    a1, a2 = a[:NHID], a[NHID:]
    bias = jnp.zeros((1, NHID), jnp.float32)
    params = (W, a1, a2, bias)

    h_out, alpha = hicoex_forward(x, edge_index, params)
    h_out = jax.block_until_ready(h_out)
    alpha = jax.block_until_ready(alpha)

    h_ref, alpha_ref = _reference_forward(x, edge_index, params)
    assert jnp.allclose(h_out, h_ref, rtol=2e-3, atol=2e-3)
    assert jnp.allclose(alpha, alpha_ref, rtol=2e-3, atol=2e-3)
    assert h_out.shape == (N, NHID) and alpha.shape == (E,)

    print("KERNEL_OK")
</pallas_src>

<mosaic_0001>
module attributes {stable_mosaic.version = 11 : i64} {
  func.func @_proj_kernel(%arg0: i32, %arg1: memref<16x8xf32, #tpu.memory_space<vmem>>, %arg2: memref<8x32xf32, #tpu.memory_space<vmem>>, %arg3: memref<32x2xf32, #tpu.memory_space<vmem>>, %arg4: memref<16x32xf32, #tpu.memory_space<vmem>>, %arg5: memref<16x2xf32, #tpu.memory_space<vmem>>) attributes {dimension_semantics = [#tpu.dimension_semantics<parallel>], iteration_bounds = array<i64: 1>, scalar_prefetch = 0 : i64, scratch_operands = 0 : i64, tpu.core_type = #tpu.core_type<tc>, window_params = [{transform_indices = @transform_0, window_bounds = array<i64: 16, 8>}, {pipeline_mode = #tpu.pipeline_mode<synchronous>, transform_indices = @transform_1, window_bounds = array<i64: 8, 32>}, {pipeline_mode = #tpu.pipeline_mode<synchronous>, transform_indices = @transform_2, window_bounds = array<i64: 32, 2>}, {transform_indices = @transform_3, window_bounds = array<i64: 16, 32>}, {transform_indices = @transform_4, window_bounds = array<i64: 16, 2>}]} {
    %c0 = arith.constant 0 : index
    %c0_0 = arith.constant 0 : index
    %0 = vector.load %arg1[%c0, %c0_0] : memref<16x8xf32, #tpu.memory_space<vmem>>, vector<16x8xf32>
    %c0_1 = arith.constant 0 : index
    %c0_2 = arith.constant 0 : index
    %1 = vector.load %arg2[%c0_1, %c0_2] : memref<8x32xf32, #tpu.memory_space<vmem>>, vector<8x32xf32>
    %cst = arith.constant dense<0.000000e+00> : vector<16x32xf32>
    %2 = tpu.matmul %0, %1, %cst {dimension_numbers = #tpu.dot_dimension_numbers<[1], [0], [0], [1], [0, 0, 1, 1], [], []>} : vector<16x8xf32>, vector<8x32xf32>, vector<16x32xf32> -> vector<16x32xf32>
    %c0_3 = arith.constant 0 : index
    %c0_4 = arith.constant 0 : index
    %3 = vector.load %arg4[%c0_3, %c0_4] : memref<16x32xf32, #tpu.memory_space<vmem>>, vector<16x32xf32>
    tpu.vector_store %arg4[%c0_3, %c0_4], %2 {strides = array<i32>} : memref<16x32xf32, #tpu.memory_space<vmem>>, vector<16x32xf32>,
    %c0_5 = arith.constant 0 : index
    %c0_6 = arith.constant 0 : index
    %4 = vector.load %arg3[%c0_5, %c0_6] : memref<32x2xf32, #tpu.memory_space<vmem>>, vector<32x2xf32>
    %cst_7 = arith.constant dense<0.000000e+00> : vector<16x2xf32>
    %5 = tpu.matmul %2, %4, %cst_7 {dimension_numbers = #tpu.dot_dimension_numbers<[1], [0], [0], [1], [0, 0, 1, 1], [], []>} : vector<16x32xf32>, vector<32x2xf32>, vector<16x2xf32> -> vector<16x2xf32>
    %c0_8 = arith.constant 0 : index
    %c0_9 = arith.constant 0 : index
    %6 = vector.load %arg5[%c0_8, %c0_9] : memref<16x2xf32, #tpu.memory_space<vmem>>, vector<16x2xf32>
    tpu.vector_store %arg5[%c0_8, %c0_9], %5 {strides = array<i32>} : memref<16x2xf32, #tpu.memory_space<vmem>>, vector<16x2xf32>,
    return
  }
  func.func @transform_0(%arg0: i32) -> (i32, i32) {
    %c0_i32 = arith.constant 0 : i32
    %c0_i32_0 = arith.constant 0 : i32
    return %arg0, %c0_i32 : i32, i32
  }
  func.func @transform_1(%arg0: i32) -> (i32, i32) {
    %c0_i32 = arith.constant 0 : i32
    %c0_i32_0 = arith.constant 0 : i32
    %c0_i32_1 = arith.constant 0 : i32
    return %c0_i32, %c0_i32_0 : i32, i32
  }
  func.func @transform_2(%arg0: i32) -> (i32, i32) {
    %c0_i32 = arith.constant 0 : i32
    %c0_i32_0 = arith.constant 0 : i32
    %c0_i32_1 = arith.constant 0 : i32
    return %c0_i32, %c0_i32_0 : i32, i32
  }
  func.func @transform_3(%arg0: i32) -> (i32, i32) {
    %c0_i32 = arith.constant 0 : i32
    %c0_i32_0 = arith.constant 0 : i32
    return %arg0, %c0_i32 : i32, i32
  }
  func.func @transform_4(%arg0: i32) -> (i32, i32) {
    %c0_i32 = arith.constant 0 : i32
    %c0_i32_0 = arith.constant 0 : i32
    return %arg0, %c0_i32 : i32, i32
  }
}

</mosaic_0001>

<bundles_post_ra>
// kernel: tpu_custom_call.1
= control target key start
LH: loop header
LB: loop body
LE: loop exit
PB: predicated region body
PF: predicated region fallthrough
CT: control target
= control target key end

     0   :  { %vm20_vm0 = vcmask 64512   ;;  %s207_s0 = inlined_call_operand.vmem [shape: f32[16,8], index: 0, kind: input, shape index: {}]   ;;  %s208_s1 = inlined_call_operand.vmem [shape: f32[8,32], index: 1, kind: input, shape index: {}]   ;;  %s209_s2 = inlined_call_operand.vmem [shape: f32[32,2], index: 2, kind: input, shape index: {}]   ;;  %s210_s3 = inlined_call_operand.hbm [shape: f32[16,32], index: 3, kind: output, shape index: {0}]   ;;  %s211_s4 = inlined_call_operand.vmem [shape: f32[16,2], index: 4, kind: output, shape index: {1}]  }
   0x1   :  { %v19_v0 = vld [vmem:[%s208_s1] sm:$0xff]  ;;  %v18_v1 = vld [vmem:[%s207_s0 + $0x8] sm:$0xff]  ;;  %v56_v3 = vld [vmem:[%s209_s2 + $0x18] sm:$0xff] }
   0x2   :  { %v17_v2 = vld [vmem:[%s207_s0] sm:$0xff]  ;;  %115 = vmatpush.msra.mxu3 %v19_v0  ;;  %42 = vmatpush.msra.mxu0 %v19_v0  ;;  %v55_v4 = vld [vmem:[%s209_s2 + $0x10] sm:$0xff] }
   0x3   :  { %112 = vmatmul.msk.f32.vlgmr.msra.gmra.mxu3 %vm20_vm0, %v18_v1  ;;  %111 = vmatmul.msk.f32.vlgmr.msra.gmra.mxu0 %vm20_vm0, %v17_v2 }
   0x4   :  { %10 = vsyncpa [#allocation3], 0  ;;  %116 = vmatpush.msra.mxu2 %v56_v3  ;;  %75 = vmatpush.msra.mxu1 %v56_v3  ;;  %v54_v5 = vld [vmem:[%s209_s2 + $0x8] sm:$0xff]  ;;  %v53_v6 = vld [vmem:[%s209_s2] sm:$0xff]  ;;  %vm50_vm1 = vcmask 261120   ;;  %s149_s27 = smov [#allocation2]  }
   0x5   :  { %s93_s28 = sshll.u32 %s149_s27, 4  ;;  %s95_s5 = sshll.u32 %s210_s3, 4  ;;  %vm86_vm2 = vcmask 15360   ;;  %s94_s28 = int_to_ptr.vmem [resolvable:$true] %s93_s28  ;;  %s96_s5 = int_to_ptr.hbm [resolvable:$true] %s95_s5 }
   0x6   :  { %117 = vmatpush.msra.mxu2 %v55_v4  ;;  %76 = vmatpush.msra.mxu1 %v55_v4  ;;  %s150_s6 = smov 128   ;;  %s151_s7 = smov 8  }
   0x8   :  { %118 = vmatpush.msra.mxu2 %v54_v5  ;;  %77 = vmatpush.msra.mxu1 %v54_v5 }
   0xa   :  { %119 = vmatpush.msra.mxu2 %v53_v6  ;;  %78 = vmatpush.msra.mxu1 %v53_v6 }
  0x80   :  { %v44_v7 = vpop.f32.mrf.mxu0 }
  0x81   :  { %51 = vst.msk [vmem:[#allocation2] sm:$0xff] %vm50_vm1, %v44_v7  ;;  %113 = vmatmul.msk.f32.vlgmr.msra.gmra.mxu1 %vm50_vm1, %v44_v7 }
  0x86   :  { %v47_v8 = vpop.f32.mrf.mxu3 }
  0x87   :  { %52 = vst.msk [vmem:[#allocation2 + $0x8] sm:$0xff] %vm50_vm1, %v47_v8  ;;  %114 = vmatmul.msk.f32.vlgmr.msra.gmra.mxu2 %vm50_vm1, %v47_v8 }
  0x88   :  { %101 = dma.vmem_to_hbm [thread:$0]  %s94_s28, 256, %s96_s5, [#allocation3], %s150_s6, %s150_s6, %s151_s7  }
  0xfe   :  { %v80_v9 = vpop.f32.mrf.mxu1 }
  0xff   :  { %87 = vst.msk [vmem:[%s211_s4] sm:$0xff] %vm86_vm2, %v80_v9 }
 0x10a   :  { %v83_v10 = vpop.f32.mrf.mxu2 }
 0x10b   :  { %88 = vst.msk [vmem:[%s211_s4 + $0x8] sm:$0xff] %vm86_vm2, %v83_v10 }
 0x10c   :  { %147 = dma.done.wait [#allocation3], 256  }
 0x10d   :  { %148 = vsyncadd [#allocation3], 4294967040 }
 0x10e   :  { %110 = vsyncpa [#allocation3], 1 }

</bundles_post_ra>
